<compile_context>
chip_gen: v5e
topology: v5e:2x2
jax: 0.10.0
libtpu: 0.0.40
codegen_flags: <defaults>
</compile_context>

<pallas_src>
import jax
import jax.numpy as jnp
from jax.experimental import pallas as pl
from jax.experimental.pallas import tpu as pltpu

BN_EPS = 1e-5   # PyTorch BatchNorm1d default
LANE = 128      # TPU lane width


def _round_up(n, m):
    return ((n + m - 1) // m) * m


# --------------------------------------------------------------------------- #
# Kernel: three MXU dots + fused bias/BN shift + tanh/tanh/sigmoid epilogue.
# All weights are VMEM-resident (constant index_map); only x / out stream.
# --------------------------------------------------------------------------- #
def _vnn_kernel(x_ref, w1_ref, s1_ref, w2_ref, s2_ref, w3_ref, s3_ref, out_ref):
    x = x_ref[...]
    h1 = jnp.tanh(
        jnp.dot(x, w1_ref[...], preferred_element_type=jnp.float32) + s1_ref[...]
    )
    h2 = jnp.tanh(
        jnp.dot(h1, w2_ref[...], preferred_element_type=jnp.float32) + s2_ref[...]
    )
    y = jnp.dot(h2, w3_ref[...], preferred_element_type=jnp.float32) + s3_ref[...]
    out_ref[...] = jax.nn.sigmoid(y)


# --------------------------------------------------------------------------- #
# Host-side folding: (W*M) and inference BatchNorm collapse into (Wf, shift).
#   layer i (i=1,2):  scale = gamma * rsqrt(rv + eps)
#                     Wf    = (W * M) * scale            (broadcast over out)
#                     shift = (b - rm) * scale + beta
#   layer 3:          Wf = W * M,  shift = b
# --------------------------------------------------------------------------- #
def fold_params(params):
    (w1, m1, b1, g1, be1, rm1, rv1,
     w2, m2, b2, g2, be2, rm2, rv2,
     w3, m3, b3) = params

    scale1 = g1 * jax.lax.rsqrt(rv1 + BN_EPS)
    wf1 = (w1 * m1) * scale1
    sh1 = (b1 - rm1) * scale1 + be1

    scale2 = g2 * jax.lax.rsqrt(rv2 + BN_EPS)
    wf2 = (w2 * m2) * scale2
    sh2 = (b2 - rm2) * scale2 + be2

    wf3 = w3 * m3
    sh3 = b3
    return wf1, sh1, wf2, sh2, wf3, sh3


def vnn_forward(x, params, *, tile_b=256):
    """Fused VNN forward with a pipelined batch grid and folded params."""
    wf1, sh1, wf2, sh2, wf3, sh3 = fold_params(params)

    batch, d0 = x.shape
    d3 = wf3.shape[1]

    # Lane-dense output: zero-pad the final feature axis to a full 128 lanes so
    # the store is an unmasked vst; padding is sliced off after the call.
    d3p = _round_up(d3, LANE)
    if d3p != d3:
        wf3 = jnp.pad(wf3, ((0, 0), (0, d3p - d3)))
        sh3 = jnp.pad(sh3, ((0, 0), (0, d3p - d3)))

    # Batch tiling: multiple of 8 sublanes, largest tile that covers the batch.
    tile_b = min(tile_b, max(8, _round_up(batch, 8)))
    padded_b = _round_up(batch, tile_b)
    if padded_b != batch:
        x = jnp.pad(x, ((0, padded_b - batch), (0, 0)))

    grid = (padded_b // tile_b,)
    const2 = lambda i: (0, 0)  # weights / shifts: same block every step (VMEM-resident)

    out = pl.pallas_call(
        _vnn_kernel,
        out_shape=jax.ShapeDtypeStruct((padded_b, d3p), jnp.float32),
        grid_spec=pltpu.PrefetchScalarGridSpec(
            num_scalar_prefetch=0,
            grid=grid,
            in_specs=[
                pl.BlockSpec((tile_b, d0), lambda i: (i, 0)),   # x: block batch only
                pl.BlockSpec(wf1.shape, const2),
                pl.BlockSpec(sh1.shape, const2),
                pl.BlockSpec(wf2.shape, const2),
                pl.BlockSpec(sh2.shape, const2),
                pl.BlockSpec(wf3.shape, const2),
                pl.BlockSpec(sh3.shape, const2),
            ],
            out_specs=pl.BlockSpec((tile_b, d3p), lambda i: (i, 0)),
        ),
        compiler_params=pltpu.CompilerParams(
            dimension_semantics=("parallel",),
        ),
    )(x, wf1, sh1, wf2, sh2, wf3, sh3)

    return out[:batch, :d3]


# --------------------------------------------------------------------------- #
# Plain-JAX reference (unfolded, matches the PyTorch module's math).
# --------------------------------------------------------------------------- #
def _reference(x, params):
    (w1, m1, b1, g1, be1, rm1, rv1,
     w2, m2, b2, g2, be2, rm2, rv2,
     w3, m3, b3) = params
    h1 = x @ (w1 * m1) + b1
    h1 = jnp.tanh((h1 - rm1) * jax.lax.rsqrt(rv1 + BN_EPS) * g1 + be1)
    h2 = h1 @ (w2 * m2) + b2
    h2 = jnp.tanh((h2 - rm2) * jax.lax.rsqrt(rv2 + BN_EPS) * g2 + be2)
    h3 = h2 @ (w3 * m3) + b3
    return jax.nn.sigmoid(h3)


def make_params(key, d0, d1, d2, d3):
    ks = jax.random.split(key, 17)
    f32 = jnp.float32

    # masked-linear weights (in, out), connectivity masks (binary), biases
    w1 = jax.random.normal(ks[0], (d0, d1), f32) * 0.1
    w2 = jax.random.normal(ks[1], (d1, d2), f32) * 0.1
    w3 = jax.random.normal(ks[2], (d2, d3), f32) * 0.1
    m1 = jax.random.bernoulli(ks[3], 0.5, (d0, d1)).astype(f32)
    m2 = jax.random.bernoulli(ks[4], 0.5, (d1, d2)).astype(f32)
    m3 = jax.random.bernoulli(ks[5], 0.5, (d2, d3)).astype(f32)
    b1 = jax.random.normal(ks[6], (1, d1), f32) * 0.01
    b2 = jax.random.normal(ks[7], (1, d2), f32) * 0.01
    b3 = jax.random.normal(ks[8], (1, d3), f32) * 0.01

    # BatchNorm1d inference-mode stats/affine (non-trivial, to exercise folding)
    g1 = jax.random.uniform(ks[9], (1, d1), f32, 0.5, 1.5)
    be1 = jax.random.normal(ks[10], (1, d1), f32) * 0.1
    rm1 = jax.random.normal(ks[11], (1, d1), f32) * 0.1
    rv1 = jax.random.uniform(ks[12], (1, d1), f32, 0.5, 1.5)
    g2 = jax.random.uniform(ks[13], (1, d2), f32, 0.5, 1.5)
    be2 = jax.random.normal(ks[14], (1, d2), f32) * 0.1
    rm2 = jax.random.normal(ks[15], (1, d2), f32) * 0.1
    rv2 = jax.random.uniform(ks[16], (1, d2), f32, 0.5, 1.5)

    return (w1, m1, b1, g1, be1, rm1, rv1,
            w2, m2, b2, g2, be2, rm2, rv2,
            w3, m3, b3)


if __name__ == "__main__":
    # Small shapes consistent with the module: 3 masked layers over a pathway
    # hierarchy. batch=64 with tile_b=32 gives a 2-step grid so the batch
    # pipelining path is actually exercised.
    batch, d0, d1, d2, d3 = 64, 32, 16, 16, 4

    key = jax.random.PRNGKey(0)
    kx, kp = jax.random.split(key)
    x = jax.random.normal(kx, (batch, d0), jnp.float32)
    params = make_params(kp, d0, d1, d2, d3)

    y = vnn_forward(x, params, tile_b=32)
    jax.block_until_ready(y)

    y_ref = _reference(x, params)
    assert y.shape == (batch, d3)
    assert jnp.allclose(y, y_ref, atol=1e-5, rtol=1e-4), float(
        jnp.max(jnp.abs(y - y_ref))
    )

    print("KERNEL_OK")
</pallas_src>

<mosaic_0001>
module attributes {stable_mosaic.version = 11 : i64} {
  func.func @_vnn_kernel(%arg0: i32, %arg1: memref<32x32xf32, #tpu.memory_space<vmem>>, %arg2: memref<32x16xf32, #tpu.memory_space<vmem>>, %arg3: memref<1x16xf32, #tpu.memory_space<vmem>>, %arg4: memref<16x16xf32, #tpu.memory_space<vmem>>, %arg5: memref<1x16xf32, #tpu.memory_space<vmem>>, %arg6: memref<16x128xf32, #tpu.memory_space<vmem>>, %arg7: memref<1x128xf32, #tpu.memory_space<vmem>>, %arg8: memref<32x128xf32, #tpu.memory_space<vmem>>) attributes {dimension_semantics = [#tpu.dimension_semantics<parallel>], iteration_bounds = array<i64: 2>, scalar_prefetch = 0 : i64, scratch_operands = 0 : i64, tpu.core_type = #tpu.core_type<tc>, window_params = [{transform_indices = @transform_0, window_bounds = array<i64: 32, 32>}, {pipeline_mode = #tpu.pipeline_mode<synchronous>, transform_indices = @transform_1, window_bounds = array<i64: 32, 16>}, {pipeline_mode = #tpu.pipeline_mode<synchronous>, transform_indices = @transform_2, window_bounds = array<i64: 1, 16>}, {pipeline_mode = #tpu.pipeline_mode<synchronous>, transform_indices = @transform_3, window_bounds = array<i64: 16, 16>}, {pipeline_mode = #tpu.pipeline_mode<synchronous>, transform_indices = @transform_4, window_bounds = array<i64: 1, 16>}, {pipeline_mode = #tpu.pipeline_mode<synchronous>, transform_indices = @transform_5, window_bounds = array<i64: 16, 128>}, {pipeline_mode = #tpu.pipeline_mode<synchronous>, transform_indices = @transform_6, window_bounds = array<i64: 1, 128>}, {transform_indices = @transform_7, window_bounds = array<i64: 32, 128>}]} {
    %c0 = arith.constant 0 : index
    %c0_0 = arith.constant 0 : index
    %0 = vector.load %arg1[%c0, %c0_0] : memref<32x32xf32, #tpu.memory_space<vmem>>, vector<32x32xf32>
    %c0_1 = arith.constant 0 : index
    %c0_2 = arith.constant 0 : index
    %1 = vector.load %arg2[%c0_1, %c0_2] : memref<32x16xf32, #tpu.memory_space<vmem>>, vector<32x16xf32>
    %cst = arith.constant dense<0.000000e+00> : vector<32x16xf32>
    %2 = tpu.matmul %0, %1, %cst {dimension_numbers = #tpu.dot_dimension_numbers<[1], [0], [0], [1], [0, 0, 1, 1], [], []>} : vector<32x32xf32>, vector<32x16xf32>, vector<32x16xf32> -> vector<32x16xf32>
    %c0_3 = arith.constant 0 : index
    %c0_4 = arith.constant 0 : index
    %3 = vector.load %arg3[%c0_3, %c0_4] : memref<1x16xf32, #tpu.memory_space<vmem>>, vector<1x16xf32>
    %4 = vector.broadcast %3 : vector<1x16xf32> to vector<32x16xf32>
    %5 = arith.addf %2, %4 : vector<32x16xf32>
    %6 = math.tanh %5 : vector<32x16xf32>
    %c0_5 = arith.constant 0 : index
    %c0_6 = arith.constant 0 : index
    %7 = vector.load %arg4[%c0_5, %c0_6] : memref<16x16xf32, #tpu.memory_space<vmem>>, vector<16x16xf32>
    %cst_7 = arith.constant dense<0.000000e+00> : vector<32x16xf32>
    %8 = tpu.matmul %6, %7, %cst_7 {dimension_numbers = #tpu.dot_dimension_numbers<[1], [0], [0], [1], [0, 0, 1, 1], [], []>} : vector<32x16xf32>, vector<16x16xf32>, vector<32x16xf32> -> vector<32x16xf32>
    %c0_8 = arith.constant 0 : index
    %c0_9 = arith.constant 0 : index
    %9 = vector.load %arg5[%c0_8, %c0_9] : memref<1x16xf32, #tpu.memory_space<vmem>>, vector<1x16xf32>
    %10 = vector.broadcast %9 : vector<1x16xf32> to vector<32x16xf32>
    %11 = arith.addf %8, %10 : vector<32x16xf32>
    %12 = math.tanh %11 : vector<32x16xf32>
    %c0_10 = arith.constant 0 : index
    %c0_11 = arith.constant 0 : index
    %13 = vector.load %arg6[%c0_10, %c0_11] : memref<16x128xf32, #tpu.memory_space<vmem>>, vector<16x128xf32>
    %cst_12 = arith.constant dense<0.000000e+00> : vector<32x128xf32>
    %14 = tpu.matmul %12, %13, %cst_12 {dimension_numbers = #tpu.dot_dimension_numbers<[1], [0], [0], [1], [0, 0, 1, 1], [], []>} : vector<32x16xf32>, vector<16x128xf32>, vector<32x128xf32> -> vector<32x128xf32>
    %c0_13 = arith.constant 0 : index
    %c0_14 = arith.constant 0 : index
    %15 = vector.load %arg7[%c0_13, %c0_14] : memref<1x128xf32, #tpu.memory_space<vmem>>, vector<1x128xf32>
    %16 = vector.broadcast %15 : vector<1x128xf32> to vector<32x128xf32>
    %17 = arith.addf %14, %16 : vector<32x128xf32>
    %18 = arith.negf %17 : vector<32x128xf32>
    %19 = math.exp %18 : vector<32x128xf32>
    %cst_15 = arith.constant 1.000000e+00 : f32
    %20 = vector.broadcast %cst_15 : f32 to vector<32x128xf32>
    %21 = arith.addf %20, %19 : vector<32x128xf32>
    %22 = arith.divf %20, %21 : vector<32x128xf32>
    %c0_16 = arith.constant 0 : index
    %c0_17 = arith.constant 0 : index
    %23 = vector.load %arg8[%c0_16, %c0_17] : memref<32x128xf32, #tpu.memory_space<vmem>>, vector<32x128xf32>
    tpu.vector_store %arg8[%c0_16, %c0_17], %22 {strides = array<i32>} : memref<32x128xf32, #tpu.memory_space<vmem>>, vector<32x128xf32>,
    return
  }
  func.func @transform_0(%arg0: i32) -> (i32, i32) {
    %c0_i32 = arith.constant 0 : i32
    %c0_i32_0 = arith.constant 0 : i32
    return %arg0, %c0_i32 : i32, i32
  }
  func.func @transform_1(%arg0: i32) -> (i32, i32) {
    %c0_i32 = arith.constant 0 : i32
    %c0_i32_0 = arith.constant 0 : i32
    %c0_i32_1 = arith.constant 0 : i32
    return %c0_i32, %c0_i32_0 : i32, i32
  }
  func.func @transform_2(%arg0: i32) -> (i32, i32) {
    %c0_i32 = arith.constant 0 : i32
    %c0_i32_0 = arith.constant 0 : i32
    %c0_i32_1 = arith.constant 0 : i32
    return %c0_i32, %c0_i32_0 : i32, i32
  }
  func.func @transform_3(%arg0: i32) -> (i32, i32) {
    %c0_i32 = arith.constant 0 : i32
    %c0_i32_0 = arith.constant 0 : i32
    %c0_i32_1 = arith.constant 0 : i32
    return %c0_i32, %c0_i32_0 : i32, i32
  }
  func.func @transform_4(%arg0: i32) -> (i32, i32) {
    %c0_i32 = arith.constant 0 : i32
    %c0_i32_0 = arith.constant 0 : i32
    %c0_i32_1 = arith.constant 0 : i32
    return %c0_i32, %c0_i32_0 : i32, i32
  }
  func.func @transform_5(%arg0: i32) -> (i32, i32) {
    %c0_i32 = arith.constant 0 : i32
    %c0_i32_0 = arith.constant 0 : i32
    %c0_i32_1 = arith.constant 0 : i32
    return %c0_i32, %c0_i32_0 : i32, i32
  }
  func.func @transform_6(%arg0: i32) -> (i32, i32) {
    %c0_i32 = arith.constant 0 : i32
    %c0_i32_0 = arith.constant 0 : i32
    %c0_i32_1 = arith.constant 0 : i32
    return %c0_i32, %c0_i32_0 : i32, i32
  }
  func.func @transform_7(%arg0: i32) -> (i32, i32) {
    %c0_i32 = arith.constant 0 : i32
    %c0_i32_0 = arith.constant 0 : i32
    return %arg0, %c0_i32 : i32, i32
  }
}

</mosaic_0001>

<bundles_post_ra>
// kernel: tpu_custom_call.1
= control target key start
LH: loop header
LB: loop body
LE: loop exit
PB: predicated region body
PF: predicated region fallthrough
CT: control target
= control target key end

     0   :  { %12 = vsyncpa [#allocation3], 0  ;;  %s946_s0 = inlined_call_operand.vmem [shape: f32[64,32], index: 0, kind: input, shape index: {}]   ;;  %s947_s1 = inlined_call_operand.vmem [shape: f32[32,16], index: 1, kind: input, shape index: {}]   ;;  %s948_s2 = inlined_call_operand.vmem [shape: f32[1,16], index: 2, kind: input, shape index: {}]   ;;  %s949_s3 = inlined_call_operand.vmem [shape: f32[16,16], index: 3, kind: input, shape index: {}]   ;;  %s950_s4 = inlined_call_operand.vmem [shape: f32[1,16], index: 4, kind: input, shape index: {}]   ;;  %s951_s5 = inlined_call_operand.vmem [shape: f32[16,128], index: 5, kind: input, shape index: {}]   ;;  %s952_s6 = inlined_call_operand.vmem [shape: f32[1,128], index: 6, kind: input, shape index: {}]   ;;  %s953_s7 = inlined_call_operand.hbm [shape: f32[64,128], index: 7, kind: output, shape index: {}]  }
   0x1   :  { %14 = vsyncpa [#allocation3 + $0x1], 0  ;;  %s810_s24 = smov 0   ;;  %s812_s25 = smov 0  }
   0x2   :  { %s814_s26 = smov 0   ;;  %s816_s27 = smov 0  }
   0x3 LB: > { %s831_s28 = sadd.s32 4294967295, %s766_s27   ;;  %s595_s29 = sadd.s32 4294967294, %s766_s27   ;;  %s766_s27 = sphi %s816_s27, %s959_s27   ;;  %s762_s26 = sphi %s814_s26, %s958_s26   ;;  %s758_s25 = sphi %s812_s25, %s957_s25   ;;  %s754_s24 = sphi %s810_s24, %s956_s24  }
   0x4   : > { %s835_s30 = sadd.s32 1, %s766_s27   ;;  %s179_s8 = sadd.s32 1, %s762_s26 }
   0x5   : > { %s176_s9 = ssub.s32 %s766_s27, %s835_s30  ;;  %p189_p0 = scmp.ne.s32.totalorder %s762_s26, %s758_s25 }
   0x6   : > { %p177_p1 = scmp.eq.s32.totalorder %s176_s9, 0  ;;  %p190_p2 = scmp.eq.s32.totalorder %s831_s28, 1 }
   0x7   : > { %p195_p3 = scmp.ne.s32.totalorder %s758_s25, %s754_s24  ;;  %p196_p4 = scmp.eq.s32.totalorder %s595_s29, 1 }
   0x8   : > { %s846_s10 = scalar_select %p177_p1, %s762_s26, %s179_s8  }
   0x9   : > { %p848_p5 = por %p190_p2, %p189_p0  ;;  %p852_p6 = por %p196_p4, %p195_p3 }
   0xa   : > { %p598_p7 = scmp.ge.s32.totalorder %s766_s27, 1  ;;  %p241_p8 = scmp.lt.s32.totalorder %s766_s27, 3 }
   0xc   : > { %p242_p9 = pnand %p598_p7, %p241_p8 }
   0xd   : > { %s600_s17 = sshll.u32 (!%p242_p9), %s831_s28, 2  ;;  %s270_s9 = sand.u32 (!%p242_p9), 1, %s758_s25  }
   0xe   : > { %245 = sbr.rel (%p242_p9) target bundleno = 487 (0x1e7), region = 48  ;;  %p274_p10 = scmp.lt.s32.totalorder (!%p242_p9), %s600_s17, 7 }
   0xf   : > { %s599_s13 = sshll.u32 (!%p242_p9), %s270_s9, 5  ;;  %s623_s15 = sshll.u32 (!%p242_p9), %s831_s28, 5 }
  0x10   : > { %s906_s14 = scalar_lea.vmem (!%p242_p9), [#allocation2], %s599_s13  ;;  %s529_s18 = scalar_lea.hbm (!%p242_p9), %s953_s7, %s623_s15 }
  0x11   : > { %s530_s28 = sshll.u32 (!%p242_p9), %s906_s14, 4  ;;  %s532_s19 = sshll.u32 (!%p242_p9), %s529_s18, 4  ;;  %s531_s28 = int_to_ptr.vmem [resolvable:$true] %s530_s28  ;;  %s533_s19 = int_to_ptr.hbm [resolvable:$true] %s532_s19 }
  0x12   : > { %s518_s20 = scalar_lea.sflag (!%p242_p9), [#allocation3], %s270_s9  ;;  %s718_s21 = sshra.s32 (!%p242_p9), %s533_s19, 4  ;;  %s719_s21 = int_to_ptr.hbm [resolvable:$true] %s718_s21 }
  0x13   : > { %v287_v0 = vld [vmem:[%s947_s1 + $0x18] sm:$0xff]  ;;  %v286_v1 = vld [vmem:[%s947_s1 + $0x10] sm:$0xff]  ;;  %v285_v2 = vld [vmem:[%s947_s1 + $0x8] sm:$0xff]  ;;  %s961_s17 = smov (!%p274_p10, %s600_s17), 7  ;;  %vm292_vm0 = vcmask 261120   ;;  %vm344_vm1 = vcmask 130048   ;;  %p725_p0 = scmp.lt.s32.totalorder %s719_s21, %s953_s7 }
  0x14   : > { %317 = vmatpush.msra.mxu0 %v287_v0  ;;  %624 = vmatpush.msra.mxu3 %v287_v0  ;;  %v284_v3 = vld [vmem:[%s947_s1] sm:$0xff]  ;;  %s601_s22 = sshll.u32 %s961_s17, 3  ;;  %v339_v8 = vld [vmem:[%s949_s3 + $0x8] sm:$0xff] }
  0x15   : > { %s277_s8 = scalar_lea.vmem %s946_s0, %s601_s22  ;;  %371 = vmatpush.msra.mxu1 %v339_v8  ;;  %v338_v9 = vld [vmem:[%s949_s3] sm:$0xff]  ;;  %v391_v23 = vld [vmem:[%s951_s5 + $0x8] sm:$0xff]  ;;  %s720_s22 = scalar_lea.hbm %s719_s21, 32 }
  0x16   : > { %318 = vmatpush.msra.mxu0 %v286_v1  ;;  %625 = vmatpush.msra.mxu3 %v286_v1  ;;  %v280_v4 = vld [vmem:[%s277_s8] sm:$0xff]  ;;  %v281_v5 = vld [vmem:[%s277_s8 + $0x8] sm:$0xff]  ;;  %v282_v6 = vld [vmem:[%s277_s8 + $0x10] sm:$0xff]  ;;  %p721_p11 = scmp.ne.s32.totalorder %s719_s21, %s720_s22 }
  0x17   : > { %v283_v7 = vld [vmem:[%s277_s8 + $0x18] sm:$0xff]  ;;  %372 = vmatpush.msra.mxu1 %v338_v9  ;;  %v669_v10 = vld [vmem:[%s948_s2] ss:$0 sm:$0xff]  ;;  %422 = vmatpush.msra.mxu2 %v391_v23  ;;  %s724_s8 = scalar_lea.hbm %s953_s7, 64 }
  0x18   : > { %319 = vmatpush.msra.mxu0 %v285_v2  ;;  %626 = vmatpush.msra.mxu3 %v285_v2  ;;  %v390_v24 = vld [vmem:[%s951_s5] sm:$0xff]  ;;  %p722_p12 = pnand %p721_p11, %p848_p5  ;;  %p726_p1 = scmp.lt.s32.totalorder %s724_s8, %s720_s22 }
  0x19   : > { %423 = vmatpush.msra.mxu2 %v390_v24  ;;  %v670_v25 = vld [vmem:[%s950_s4] ss:$0 sm:$0xff] }
  0x1a   : > { %320 = vmatpush.msra.mxu0 %v284_v3  ;;  %627 = vmatpush.msra.mxu3 %v284_v3  ;;  %v671_v38 = vld [vmem:[%s952_s6] ss:$0 sm:$0xff]  ;;  %p723_p13 = pneg %p722_p12  ;;  %p727_p2 = por %p726_p1, %p725_p0 }
  0x1b   : > { %602 = vmatmul.msk.f32.vlgmr.msra.gmra.mxu0 %vm292_vm0, %v280_v4  ;;  %603 = vmatmul.msk.f32.vlgmr.msra.gmra.mxu3 %vm292_vm0, %v281_v5 }
  0x1c   : > { %p728_p3 = pnand %p727_p2, %p723_p13 }
  0x23   : > { %604 = vmatmul.msk.f32.gmra.mxu3 %vm292_vm0, %v282_v6 }
  0x2b   : > { %605 = vmatmul.msk.f32.gmra.mxu3 %vm292_vm0, %v283_v7 }
  0x98   : > { %v322_v11 = vpop.f32.mrf.mxu0 }
  0x99   : > { %v323_v12 = vadd.f32 %v669_v10, %v322_v11 }
  0x9b   : > { %672 = vtanh.f32 %v323_v12 }
  0x9e   : > { %v325_v13 = vpop.f32.mrf.mxu3 }
  0x9f   : > { %v326_v14 = vadd.f32 %v669_v10, %v325_v13 }
  0xa1   : > { %v673_v15 = vpop.eup %672  ;;  %674 = vtanh.f32 %v326_v14 }
  0xa2   : > { %606 = vmatmul.msk.f32.vlgmr.msra.gmra.mxu1 %vm344_vm1, %v673_v15 }
  0xa6   : > { %v328_v16 = vpop.f32.mrf.mxu3 }
  0xa7   : > { %v675_v17 = vpop.eup %674  ;;  %v329_v18 = vadd.f32 %v669_v10, %v328_v16 }
  0xa9   : > { %676 = vtanh.f32 %v329_v18 }
  0xaa   : > { %607 = vmatmul.msk.f32.gmra.mxu1 %vm344_vm1, %v675_v17 }
  0xae   : > { %v331_v19 = vpop.f32.mrf.mxu3 }
  0xaf   : > { %v677_v20 = vpop.eup %676  ;;  %v332_v21 = vadd.f32 %v669_v10, %v331_v19 }
  0xb1   : > { %678 = vtanh.f32 %v332_v21 }
  0xb2   : > { %608 = vmatmul.msk.f32.gmra.mxu1 %vm344_vm1, %v677_v20 }
  0xb7   : > { %v679_v22 = vpop.eup %678 }
  0xba   : > { %609 = vmatmul.msk.f32.gmra.mxu1 %vm344_vm1, %v679_v22 }
 0x11f   : > { %v374_v26 = vpop.f32.mrf.mxu1 }
 0x120   : > { %v375_v27 = vadd.f32 %v670_v25, %v374_v26 }
 0x122   : > { %680 = vtanh.f32 %v375_v27 }
 0x127   : > { %v377_v28 = vpop.f32.mrf.mxu1 }
 0x128   : > { %v681_v29 = vpop.eup %680  ;;  %v378_v30 = vadd.f32 %v670_v25, %v377_v28 }
 0x129   : > { %610 = vmatmul.msk.f32.vlgmr.msra.gmra.mxu2 %vm344_vm1, %v681_v29 }
 0x12a   : > { %682 = vtanh.f32 %v378_v30 }
 0x12f   : > { %v380_v31 = vpop.f32.mrf.mxu1 }
 0x130   : > { %v683_v32 = vpop.eup %682  ;;  %v381_v33 = vadd.f32 %v670_v25, %v380_v31 }
 0x131   : > { %611 = vmatmul.msk.f32.gmra.mxu2 %vm344_vm1, %v683_v32 }
 0x132   : > { %684 = vtanh.f32 %v381_v33 }
 0x137   : > { %v383_v34 = vpop.f32.mrf.mxu1 }
 0x138   : > { %v685_v35 = vpop.eup %684  ;;  %v384_v36 = vadd.f32 %v670_v25, %v383_v34 }
 0x139   : > { %612 = vmatmul.msk.f32.gmra.mxu2 %vm344_vm1, %v685_v35 }
 0x13a   : > { %686 = vtanh.f32 %v384_v36 }
 0x140   : > { %v687_v37 = vpop.eup %686 }
 0x141   : > { %613 = vmatmul.msk.f32.gmra.mxu2 %vm344_vm1, %v687_v37 }
 0x1ac   : > { %v425_v39 = vpop.f32.mrf.mxu2 }
 0x1ad   : > { %v426_v40 = vadd.f32 %v671_v38, %v425_v39 }
 0x1af   : > { %v614_v41 = vmul.f32 -1.442695, %v426_v40 }
 0x1b1   : > { %688 = vpow2.f32 %v614_v41 }
 0x1b4   : > { %v428_v42 = vpop.f32.mrf.mxu2 }
 0x1b5   : > { %v429_v43 = vadd.f32 %v671_v38, %v428_v42 }
 0x1b7   : > { %v689_v44 = vpop.eup %688  ;;  %v615_v45 = vmul.f32 -1.442695, %v429_v43 }
 0x1b8   : > { %v449_v46 = vadd.f32 1.0, %v689_v44 }
 0x1b9   : > { %690 = vpow2.f32 %v615_v45 }
 0x1ba   : > { %692 = vrcp.f32 %v449_v46  ;;  %v464_v55 = vand.u32 2147483648, %v449_v46  ;;  %v462_v58 = vand.u32 2147483647, %v449_v46  ;;  %vm458_vm3 = vweird.f32 %v449_v46 }
 0x1bc   : > { %v431_v47 = vpop.f32.mrf.mxu2  ;;  %v465_v0 = vor.u32 1.1754944e-38, %v464_v55  ;;  %vm463_vm5 = vcmp.eq.f32.partialorder %v462_v58, 8.507059e+37 }
 0x1bd   : > { %v432_v48 = vadd.f32 %v671_v38, %v431_v47 }
 0x1bf   : > { %v691_v49 = vpop.eup %690  ;;  %v616_v50 = vmul.f32 -1.442695, %v432_v48 }
 0x1c0   : > { %v693_v51 = vpop.eup %692  ;;  %v450_v52 = vadd.f32 1.0, %v691_v49 }
 0x1c1   : > { %v454_v53 = vmul.f32 %v693_v51, %v449_v46  ;;  %694 = vpow2.f32 %v616_v50  ;;  %vm459_vm2 = vweird.f32 %v693_v51 }
 0x1c2   : > { %696 = vrcp.f32 %v450_v52  ;;  %vm460_vm4 = vmor %vm458_vm3, %vm459_vm2  ;;  %v479_v6 = vand.u32 2147483648, %v450_v52  ;;  %v477_v8 = vand.u32 2147483647, %v450_v52  ;;  %vm473_vm7 = vweird.f32 %v450_v52 }
 0x1c3   : > { %v455_v54 = vsub.f32 1.0, %v454_v53 }
 0x1c4   : > { %v434_v56 = vpop.f32.mrf.mxu2  ;;  %v480_v12 = vor.u32 1.1754944e-38, %v479_v6  ;;  %vm478_vm9 = vcmp.eq.f32.partialorder %v477_v8, 8.507059e+37 }
 0x1c5   : > { %v456_v57 = vmul.f32 %v693_v51, %v455_v54  ;;  %v435_v59 = vadd.f32 %v671_v38, %v434_v56 }
 0x1c7   : > { %v695_v60 = vpop.eup %694  ;;  %v457_v61 = vadd.f32 %v693_v51, %v456_v57  ;;  %v617_v62 = vmul.f32 -1.442695, %v435_v59 }
 0x1c8   : > { %v697_v63 = vpop.eup %696  ;;  %v451_v1 = vadd.f32 1.0, %v695_v60 }
 0x1c9   : > { %v461_v2 = vsel %vm460_vm4, %v693_v51, %v457_v61  ;;  %v469_v3 = vmul.f32 %v697_v63, %v450_v52  ;;  %698 = vpow2.f32 %v617_v62  ;;  %vm474_vm6 = vweird.f32 %v697_v63 }
 0x1ca   : > { %v466_v4 = vsel %vm463_vm5, %v465_v0, %v461_v2  ;;  %700 = vrcp.f32 %v451_v1  ;;  %vm475_vm8 = vmor %vm473_vm7, %vm474_vm6  ;;  %v494_v18 = vand.u32 2147483648, %v451_v1  ;;  %v492_v20 = vand.u32 2147483647, %v451_v1 }
 0x1cb   : > { %513 = vst [vmem:[%s906_s14] sm:$0xff] %v466_v4  ;;  %v470_v5 = vsub.f32 1.0, %v469_v3  ;;  %vm488_vm11 = vweird.f32 %v451_v1 }
 0x1cc   : > { %v495_v23 = vor.u32 1.1754944e-38, %v494_v18  ;;  %vm493_vm13 = vcmp.eq.f32.partialorder %v492_v20, 8.507059e+37 }
 0x1cd   : > { %v471_v7 = vmul.f32 %v697_v63, %v470_v5 }
 0x1cf   : > { %v699_v9 = vpop.eup %698  ;;  %v472_v10 = vadd.f32 %v697_v63, %v471_v7 }
 0x1d0   : > { %v701_v11 = vpop.eup %700  ;;  %v452_v13 = vadd.f32 1.0, %v699_v9 }
 0x1d1   : > { %v476_v14 = vsel %vm475_vm8, %v697_v63, %v472_v10  ;;  %v484_v15 = vmul.f32 %v701_v11, %v451_v1  ;;  %vm489_vm10 = vweird.f32 %v701_v11 }
 0x1d2   : > { %v481_v16 = vsel %vm478_vm9, %v480_v12, %v476_v14  ;;  %702 = vrcp.f32 %v452_v13  ;;  %vm490_vm12 = vmor %vm488_vm11, %vm489_vm10  ;;  %v509_v28 = vand.u32 2147483648, %v452_v13  ;;  %v507_v30 = vand.u32 2147483647, %v452_v13 }
 0x1d3   : > { %514 = vst [vmem:[%s906_s14 + $0x8] sm:$0xff] %v481_v16  ;;  %v485_v17 = vsub.f32 1.0, %v484_v15  ;;  %vm503_vm15 = vweird.f32 %v452_v13 }
 0x1d4   : > { %v510_v32 = vor.u32 1.1754944e-38, %v509_v28  ;;  %vm508_vm1 = vcmp.eq.f32.partialorder %v507_v30, 8.507059e+37 }
 0x1d5   : > { %v486_v19 = vmul.f32 %v701_v11, %v485_v17 }
 0x1d7   : > { %v487_v21 = vadd.f32 %v701_v11, %v486_v19 }
 0x1d8   : > { %v703_v22 = vpop.eup %702 }
 0x1d9   : > { %v491_v24 = vsel %vm490_vm12, %v701_v11, %v487_v21  ;;  %v499_v25 = vmul.f32 %v703_v22, %v452_v13  ;;  %vm504_vm14 = vweird.f32 %v703_v22 }
 0x1da   : > { %v496_v26 = vsel %vm493_vm13, %v495_v23, %v491_v24  ;;  %vm505_vm0 = vmor %vm503_vm15, %vm504_vm14 }
 0x1db   : > { %515 = vst [vmem:[%s906_s14 + $0x10] sm:$0xff] %v496_v26  ;;  %v500_v27 = vsub.f32 1.0, %v499_v25 }
 0x1dd   : > { %v501_v29 = vmul.f32 %v703_v22, %v500_v27 }
 0x1df   : > { %v502_v31 = vadd.f32 %v703_v22, %v501_v29 }
 0x1e1   : > { %v506_v33 = vsel %vm505_vm0, %v703_v22, %v502_v31 }
 0x1e2   : > { %v511_v34 = vsel %vm508_vm1, %v510_v32, %v506_v33 }
 0x1e3   : > { %516 = vst [vmem:[%s906_s14 + $0x18] sm:$0xff] %v511_v34 }
 0x1e4   : > { %731 = shalt.err (!%p728_p3)
}
 0x1e5   : > { %s768_s9 = smov 128   ;;  %s769_s14 = smov 8  }
 0x1e6   : > { %628 = dma.vmem_to_hbm [thread:$0]  (%p848_p5), %s531_s28, 512, %s533_s19, %s518_s20, %s768_s9, %s768_s9, %s769_s14  }
 0x1e7 PF: > { %p634_p4 = scmp.ge.s32.totalorder %s766_s27, 2  ;;  %s547_s16 = sand.u32 1, %s754_s24  }
 0x1e8   : > { %s548_s17 = scalar_lea.sflag [#allocation3], %s547_s16 }
 0x1e9   : > { %p631_p7 = pnand %p634_p4, %p852_p6 }
 0x1eb   : > { %p632_p8 = pneg %p631_p7 }
 0x1ed   : > { %749 = dma.done.wait (%p632_p8), %s548_s17, 512  }
 0x1ee   : > { %751 = vsyncadd (%p632_p8), %s548_s17, 4294966784  ;;  %p17_p9 = scmp.ge.s32.totalorder %s835_s30, 4   ;;  %s956_s24 = smov %s758_s25 }
 0x1ef   : > { %s957_s25 = smov %s762_s26  ;;  %s958_s26 = smov %s846_s10 }
 0x1f0   : > { %s959_s27 = smov %s835_s30  ;;  %19 = sbr.rel (!%p17_p9) target bundleno = 3 (0x3), region = 83 }
 0x1f5   :  { %554 = vsyncpa [#allocation3], 1 }
 0x1f6   :  { %556 = vsyncpa [#allocation3 + $0x1], 1 }

</bundles_post_ra>
